<compile_context>
chip_gen: v5e
topology: v5e:2x2
jax: 0.10.0
libtpu: 0.0.40
codegen_flags: <defaults>
</compile_context>

<pallas_src>
import jax
import jax.numpy as jnp
from jax.experimental import pallas as pl
from jax.experimental.pallas import tpu as pltpu

EPS = 1e-6


def _round_up(n, m):
    return ((n + m - 1) // m) * m


def _vmem_capacity_bytes():
    # Generation-aware VMEM capacity (128 MiB on v5e/v6e, 64 MiB per TC on v7x).
    try:
        return int(pltpu.get_tpu_info().vmem_capacity_bytes)
    except Exception:
        return 64 * 1024 * 1024  # conservative fallback (v7x per-TC size)


# ------------------------------ LayerNorm kernel ------------------------------
def _make_layernorm_kernel(d_true):
    inv_d = 1.0 / d_true
    inv_dm1 = 1.0 / (d_true - 1)

    def kernel(w_ref, b_ref, x_ref, o_ref):
        # w_ref / b_ref: (1,) f32 scalars in SMEM; x_ref / o_ref: (rows, D_pad) VMEM.
        x = x_ref[...].astype(jnp.float32)
        # One-pass stats: both lane reductions issue back-to-back on the XLU and
        # overlap with the VPU stream.  Padded columns are exact zeros, so sums
        # over D_pad equal sums over the true D.
        s = jnp.sum(x, axis=-1, keepdims=True)
        sq = jnp.sum(x * x, axis=-1, keepdims=True)
        mean = s * inv_d
        var = (sq - s * mean) * inv_dm1           # unbiased (torch.std default)
        var = jnp.maximum(var, 0.0)               # guard tiny negative cancellation
        std = jnp.sqrt(var)
        inv = 1.0 / (std + EPS)                   # exact; one value per row, cheap
        scale = w_ref[0] * inv                    # (rows, 1)
        shift = b_ref[0] - mean * scale           # (rows, 1)
        # Per-element work: a single multiply-add on the VPU.
        o_ref[...] = (x * scale + shift).astype(o_ref.dtype)

    return kernel


def layer_norm(x2d, w, b):
    """DeepSC LayerNormalization over the last dim of a (rows, D) array."""
    R, D = x2d.shape
    assert D >= 2, "unbiased std (torch.std) requires D >= 2"
    itemsize = jnp.dtype(x2d.dtype).itemsize

    # Lane-dense feature dim: pad to a multiple of 128 (padded cols are zero and
    # sliced off afterwards; the kernel divides by the true D).
    D_pad = _round_up(D, 128)

    # Generation-aware VMEM budget drives the tile size (no artificial row cap).
    vmem_cap = _vmem_capacity_bytes()
    vmem_limit = min((vmem_cap * 3) // 4, 96 * 1024 * 1024)   # 48 MiB v7x, 96 MiB v5e/v6e
    tile_budget = (vmem_limit * 3) // 4                       # headroom for internals
    per_row_bytes = 2 * 2 * D_pad * itemsize                  # (in + out) x double-buffer
    row_tile = max(8, ((tile_budget // per_row_bytes) // 8) * 8)

    # Keep >=2 grid steps when possible so v7x's 2 TensorCores both get work
    # (dimension_semantics=("parallel",) only helps with >=2 iterations).
    if R > 8:
        row_tile = min(row_tile, _round_up((R + 1) // 2, 8))
    row_tile = min(row_tile, _round_up(R, 8))

    R_pad = _round_up(R, row_tile)

    if R_pad != R or D_pad != D:
        x_in = jnp.pad(x2d, ((0, R_pad - R), (0, D_pad - D)))
    else:
        x_in = x2d

    w = jnp.asarray(w, dtype=jnp.float32).reshape((1,))
    b = jnp.asarray(b, dtype=jnp.float32).reshape((1,))

    out = pl.pallas_call(
        _make_layernorm_kernel(D),
        out_shape=jax.ShapeDtypeStruct((R_pad, D_pad), x2d.dtype),
        grid_spec=pl.GridSpec(
            grid=(R_pad // row_tile,),
            in_specs=[
                pl.BlockSpec(memory_space=pltpu.MemorySpace.SMEM),   # w (1,)
                pl.BlockSpec(memory_space=pltpu.MemorySpace.SMEM),   # b (1,)
                pl.BlockSpec((row_tile, D_pad), lambda i: (i, 0)),
            ],
            out_specs=pl.BlockSpec((row_tile, D_pad), lambda i: (i, 0)),
        ),
        compiler_params=pltpu.CompilerParams(
            dimension_semantics=("parallel",),
            vmem_limit_bytes=vmem_limit,
        ),
    )(w, b, x_in)

    if R_pad != R or D_pad != D:
        out = out[:R, :D]
    return out


# --------------------------------- Encoder ------------------------------------
def encoder_forward(x, mask, layers, ln_w, ln_b):
    """Encoder.forward(x, mask): run user-supplied layers, then the Pallas LayerNorm."""
    for layer in layers:
        x = layer(x, mask)
    B, S, D = x.shape
    y = layer_norm(x.reshape(B * S, D), ln_w, ln_b)
    return y.reshape(B, S, D)


if __name__ == "__main__":
    key = jax.random.PRNGKey(0)
    kx, km, k1, k2 = jax.random.split(key, 4)

    # Small shapes; hidden = 128 keeps the output lane-dense (unmasked stores).
    B, S, D = 2, 8, 128
    x = jax.random.normal(kx, (B, S, D), dtype=jnp.float32)
    # Attention-style padding mask (B, S): 1 = keep, 0 = pad.
    mask = (jax.random.uniform(km, (B, S)) > 0.2).astype(jnp.float32)

    # Two toy "encoder layers" (stand-ins for the user-supplied nn.ModuleList).
    def make_layer(k):
        ka, kb = jax.random.split(k)
        W1 = jax.random.normal(ka, (D, D), dtype=jnp.float32) * 0.02
        W2 = jax.random.normal(kb, (D, D), dtype=jnp.float32) * 0.02

        def layer(h, m):
            ff = jnp.maximum(h @ W1, 0.0) @ W2
            return h + ff * m[..., None]

        return layer

    layers = [make_layer(k1), make_layer(k2)]

    # Encoder's own LayerNormalization params (nn.Parameter(torch.ones(1))).
    ln_w = jnp.ones((1,), dtype=jnp.float32)
    ln_b = jnp.ones((1,), dtype=jnp.float32)

    out = encoder_forward(x, mask, layers, ln_w, ln_b)
    out = jax.block_until_ready(out)

    # Pure-JAX reference (same math as the PyTorch module, exact division).
    h = x
    for layer in layers:
        h = layer(h, mask)
    mean = h.mean(-1, keepdims=True)
    var = jnp.sum((h - mean) ** 2, -1, keepdims=True) / (D - 1)
    ref = ln_w[0] * (h - mean) / (jnp.sqrt(var) + EPS) + ln_b[0]

    assert out.shape == (B, S, D) and out.dtype == jnp.float32
    assert bool(jnp.all(jnp.isfinite(out)))
    assert bool(jnp.allclose(out, ref, rtol=1e-4, atol=1e-4)), float(
        jnp.max(jnp.abs(out - ref))
    )
    print("KERNEL_OK")
</pallas_src>

<mosaic_0001>
module attributes {stable_mosaic.version = 11 : i64} {
  func.func @kernel(%arg0: i32, %arg1: memref<1xf32, #tpu.memory_space<smem>>, %arg2: memref<1xf32, #tpu.memory_space<smem>>, %arg3: memref<8x128xf32, #tpu.memory_space<vmem>>, %arg4: memref<8x128xf32, #tpu.memory_space<vmem>>) attributes {dimension_semantics = [#tpu.dimension_semantics<parallel>], iteration_bounds = array<i64: 2>, scalar_prefetch = 0 : i64, scratch_operands = 0 : i64, tpu.core_type = #tpu.core_type<tc>, window_params = [{transform_indices = @transform_0, window_bounds = array<i64: 1>}, {transform_indices = @transform_1, window_bounds = array<i64: 1>}, {transform_indices = @transform_2, window_bounds = array<i64: 8, 128>}, {transform_indices = @transform_3, window_bounds = array<i64: 8, 128>}]} {
    %c0 = arith.constant 0 : index
    %c0_0 = arith.constant 0 : index
    %0 = vector.load %arg3[%c0, %c0_0] : memref<8x128xf32, #tpu.memory_space<vmem>>, vector<8x128xf32>
    %cst = arith.constant dense<0.000000e+00> : vector<8xf32>
    %1 = vector.multi_reduction <add>, %0, %cst [1] : vector<8x128xf32> to vector<8xf32>
    %2 = vector.shape_cast %1 : vector<8xf32> to vector<8x1xf32>
    %3 = arith.mulf %0, %0 : vector<8x128xf32>
    %cst_1 = arith.constant dense<0.000000e+00> : vector<8xf32>
    %4 = vector.multi_reduction <add>, %3, %cst_1 [1] : vector<8x128xf32> to vector<8xf32>
    %5 = vector.shape_cast %4 : vector<8xf32> to vector<8x1xf32>
    %cst_2 = arith.constant 7.812500e-03 : f32
    %6 = vector.broadcast %cst_2 : f32 to vector<8x1xf32>
    %7 = arith.mulf %2, %6 : vector<8x1xf32>
    %8 = arith.mulf %2, %7 : vector<8x1xf32>
    %9 = arith.subf %5, %8 : vector<8x1xf32>
    %cst_3 = arith.constant 0.00787401571 : f32
    %10 = vector.broadcast %cst_3 : f32 to vector<8x1xf32>
    %11 = arith.mulf %9, %10 : vector<8x1xf32>
    %cst_4 = arith.constant 0.000000e+00 : f32
    %12 = vector.broadcast %cst_4 : f32 to vector<8x1xf32>
    %13 = arith.maximumf %11, %12 : vector<8x1xf32>
    %14 = math.sqrt %13 : vector<8x1xf32>
    %cst_5 = arith.constant 9.99999997E-7 : f32
    %15 = vector.broadcast %cst_5 : f32 to vector<8x1xf32>
    %16 = arith.addf %14, %15 : vector<8x1xf32>
    %cst_6 = arith.constant 1.000000e+00 : f32
    %17 = vector.broadcast %cst_6 : f32 to vector<8x1xf32>
    %18 = arith.divf %17, %16 : vector<8x1xf32>
    %c0_7 = arith.constant 0 : index
    %19 = memref.load %arg1[%c0_7] : memref<1xf32, #tpu.memory_space<smem>>
    %20 = vector.broadcast %19 : f32 to vector<8x1xf32>
    %21 = arith.mulf %20, %18 : vector<8x1xf32>
    %c0_8 = arith.constant 0 : index
    %22 = memref.load %arg2[%c0_8] : memref<1xf32, #tpu.memory_space<smem>>
    %23 = arith.mulf %7, %21 : vector<8x1xf32>
    %24 = vector.broadcast %22 : f32 to vector<8x1xf32>
    %25 = arith.subf %24, %23 : vector<8x1xf32>
    %26 = vector.broadcast %21 : vector<8x1xf32> to vector<8x128xf32>
    %27 = arith.mulf %0, %26 : vector<8x128xf32>
    %28 = vector.broadcast %25 : vector<8x1xf32> to vector<8x128xf32>
    %29 = arith.addf %27, %28 : vector<8x128xf32>
    %c0_9 = arith.constant 0 : index
    %c0_10 = arith.constant 0 : index
    %30 = vector.load %arg4[%c0_9, %c0_10] : memref<8x128xf32, #tpu.memory_space<vmem>>, vector<8x128xf32>
    tpu.vector_store %arg4[%c0_9, %c0_10], %29 {strides = array<i32>} : memref<8x128xf32, #tpu.memory_space<vmem>>, vector<8x128xf32>,
    return
  }
  func.func @transform_0(%arg0: i32) -> i32 {
    %c0_i32 = arith.constant 0 : i32
    %c0_i32_0 = arith.constant 0 : i32
    return %c0_i32 : i32
  }
  func.func @transform_1(%arg0: i32) -> i32 {
    %c0_i32 = arith.constant 0 : i32
    %c0_i32_0 = arith.constant 0 : i32
    return %c0_i32 : i32
  }
  func.func @transform_2(%arg0: i32) -> (i32, i32) {
    %c0_i32 = arith.constant 0 : i32
    %c0_i32_0 = arith.constant 0 : i32
    return %arg0, %c0_i32 : i32, i32
  }
  func.func @transform_3(%arg0: i32) -> (i32, i32) {
    %c0_i32 = arith.constant 0 : i32
    %c0_i32_0 = arith.constant 0 : i32
    return %arg0, %c0_i32 : i32, i32
  }
}

</mosaic_0001>

<bundles_post_ra>
// kernel: tpu_custom_call.1
= control target key start
LH: loop header
LB: loop body
LE: loop exit
PB: predicated region body
PF: predicated region fallthrough
CT: control target
= control target key end

     0   :  { %s642_s0 = inlined_call_operand.<no memory space> [shape: f32[1], index: 0, kind: input, shape index: {}]   ;;  %s643_s1 = inlined_call_operand.<no memory space> [shape: f32[1], index: 1, kind: input, shape index: {}]   ;;  %s644_s2 = inlined_call_operand.hbm [shape: f32[16,128], index: 2, kind: input, shape index: {}]   ;;  %s645_s3 = inlined_call_operand.hbm [shape: f32[16,128], index: 3, kind: output, shape index: {}]  }
   0x1   :  { %8 = sst [smem:[#allocation2]] %s642_s0 }
   0x2   :  { %9 = sst [smem:[#allocation3]] %s643_s1 }
   0x3   :  { %10 = vsyncpa [#allocation5], 0 }
   0x4   :  { %12 = vsyncpa [#allocation5 + $0x1], 0 }
   0x5   :  { %13 = vsyncpa [#allocation6], 0 }
   0x6   :  { %15 = vsyncpa [#allocation6 + $0x1], 0  ;;  %s511_s16 = smov 0   ;;  %s513_s17 = smov 0  }
   0x7   :  { %s515_s18 = smov 0   ;;  %s517_s19 = smov 0  }
   0x8 LB: > { %s532_s0 = sadd.s32 4294967295, %s483_s19   ;;  %s325_s1 = sadd.s32 4294967294, %s483_s19   ;;  %s483_s19 = sphi %s517_s19, %s655_s19   ;;  %s479_s18 = sphi %s515_s18, %s654_s18   ;;  %s475_s17 = sphi %s513_s17, %s653_s17   ;;  %s471_s16 = sphi %s511_s16, %s652_s16  }
   0x9   : > { %s536_s20 = sadd.s32 1, %s483_s19   ;;  %s70_s21 = sadd.s32 1, %s479_s18 }
   0xa   : > { %s67_s22 = ssub.s32 %s483_s19, %s536_s20  ;;  %p77_p0 = scmp.ne.s32.totalorder %s479_s18, %s475_s17 }
   0xb   : > { %p68_p1 = scmp.eq.s32.totalorder %s67_s22, 0  ;;  %p78_p2 = scmp.eq.s32.totalorder %s483_s19, 0 }
   0xc   : > { %p83_p3 = scmp.ne.s32.totalorder %s475_s17, %s471_s16  ;;  %p84_p4 = scmp.eq.s32.totalorder %s532_s0, 0 }
   0xd   : > { %s548_s23 = scalar_select %p68_p1, %s479_s18, %s70_s21  }
   0xe   : > { %p550_p5 = por %p78_p2, %p77_p0  ;;  %p554_p6 = por %p84_p4, %p83_p3 }
   0xf   : > { %p107_p7 = scmp.eq.s32.totalorder %s532_s0, 1  ;;  %p113_p8 = scmp.eq.s32.totalorder %s325_s1, 1 }
  0x10   : > { %p349_p10 = scmp.lt.s32.totalorder %s483_s19, 2  ;;  %s139_s28 = sand.u32 1, %s479_s18  }
  0x11   : > { %p561_p11 = por %p107_p7, %p77_p0  ;;  %p565_p12 = por %p113_p8, %p83_p3 }
  0x12   : > { %s329_s29 = sshll.u32 %s483_s19, 3  ;;  %s328_s30 = sshll.u32 %s139_s28, 3 }
  0x13   : > { %s147_s6 = scalar_lea.hbm %s644_s2, %s329_s29  ;;  %s143_s8 = scalar_lea.vmem [#allocation4], %s328_s30 }
  0x14   : > { %s149_s7 = sshll.u32 %s147_s6, 4  ;;  %s151_s9 = sshll.u32 %s143_s8, 4  ;;  %s150_s7 = int_to_ptr.hbm [resolvable:$true] %s149_s7  ;;  %s152_s9 = int_to_ptr.vmem [resolvable:$true] %s151_s9 }
  0x15   : > { %p576_p13 = pnand %p349_p10, %p550_p5  ;;  %p330_p0 = scmp.ge.s32.totalorder %s483_s19, 1 }
  0x16   : > { %p156_p1 = scmp.lt.s32.totalorder %s483_s19, 3  ;;  %s140_s11 = scalar_lea.sflag [#allocation5], %s139_s28 }
  0x17   : > { %s387_s12 = sshra.s32 %s150_s7, 4  ;;  %p391_p3 = pneg %p576_p13  ;;  %s388_s12 = int_to_ptr.hbm [resolvable:$true] %s387_s12 }
  0x18   : > { %s389_s13 = scalar_lea.hbm %s388_s12, 8  ;;  %s394_s1 = scalar_lea.hbm %s644_s2, 16 }
  0x19   : > { %p390_p2 = scmp.ne.s32.totalorder %s388_s12, %s389_s13  ;;  %p395_p5 = scmp.lt.s32.totalorder %s388_s12, %s644_s2 }
  0x1a   : > { %p396_p8 = scmp.lt.s32.totalorder %s394_s1, %s389_s13 }
  0x1b   : > { %p392_p4 = pnand %p391_p3, %p390_p2 }
  0x1c   : > { %p397_p10 = por %p396_p8, %p395_p5 }
  0x1d   : > { %p393_p7 = pneg %p392_p4 }
  0x1f   : > { %p398_p9 = pnand %p397_p10, %p393_p7 }
  0x21   : > { %401 = shalt.err (!%p398_p9)
}
  0x22   : > { %344 = dma.hbm_to_vmem [thread:$0]  (!%p576_p13), %s150_s7, 128, %s152_s9, %s140_s11  }
  0x23   : > { %p157_p2 = pnand %p330_p0, %p156_p1 }
  0x24   : > { %s597_s24 = sand.u32 (!%p157_p2), 1, %s475_s17  }
  0x25   : > { %160 = sbr.rel (%p157_p2) target bundleno = 225 (0xe1), region = 32  ;;  %s331_s28 = sshll.u32 (!%p157_p2), %s597_s24, 3 }
  0x26   : > { %s163_s29 = scalar_lea.sflag (!%p157_p2), [#allocation5], %s597_s24  ;;  %s166_s30 = scalar_lea.vmem (!%p157_p2), [#allocation4], %s331_s28 }
  0x2a   : > { %462 = dma.done.wait (%p554_p6), %s163_s29, 128  }
  0x2b   : > { %464 = vsyncadd (%p554_p6), %s163_s29, 4294967168  ;;  %v190_v0 = vld [vmem:[%s166_s30] sm:$0xff]  ;;  %s229_s25 = sld [smem:[#allocation2]]  ;;  %s334_s5 = sshll.u32 %s532_s0, 3 }
  0x2c   : > { %191 = vadd.xlane.f32.xlu0 %v190_v0  ;;  %v193_v1 = vmul.f32 %v190_v0, %v190_v0  ;;  %s232_s4 = sld [smem:[#allocation3]]  ;;  %s250_s8 = scalar_lea.hbm %s645_s3, %s334_s5 }
  0x2d   : > { %s189_s9 = scalar_lea.vmem [#allocation7], %s331_s28  ;;  %s254_s11 = sshll.u32 %s250_s8, 4  ;;  %s255_s11 = int_to_ptr.hbm [resolvable:$true] %s254_s11 }
  0x2e   : > { %s252_s10 = sshll.u32 %s189_s9, 4  ;;  %s240_s0 = scalar_lea.sflag [#allocation6], %s597_s24  ;;  %s253_s10 = int_to_ptr.vmem [resolvable:$true] %s252_s10 }
  0x2f   : > { %s431_s12 = sshra.s32 %s255_s11, 4  ;;  %s437_s1 = scalar_lea.hbm %s645_s3, 16  ;;  %s432_s12 = int_to_ptr.hbm [resolvable:$true] %s431_s12 }
  0x30   : > { %s433_s13 = scalar_lea.hbm %s432_s12, 8  ;;  %p438_p0 = scmp.lt.s32.totalorder %s432_s12, %s645_s3 }
  0x31   : > { %v230_v27 = vstv %s229_s25  ;;  %p434_p6 = scmp.ne.s32.totalorder %s432_s12, %s433_s13  ;;  %p439_p1 = scmp.lt.s32.totalorder %s437_s1, %s433_s13 }
  0x32   : > { %v234_v32 = vstv %s232_s4 }
  0x33   : > { %p435_p9 = pnand %p434_p6, %p561_p11  ;;  %p440_p3 = por %p439_p1, %p438_p0 }
  0x34   : > { %194 = vadd.xlane.f32.xlu0 %v193_v1 }
  0x35   : > { %p436_p13 = pneg %p435_p9 }
  0x37   : > { %p441_p4 = pnand %p440_p3, %p436_p13 }
  0x9f   : > { %v192_v2 = vpop.xlane.xlu0 %191 }
  0xa0   : > { %v196_v3 = vmul.f32 0.0078125, %v192_v2 }
  0xa2   : > { %v197_v4 = vmul.f32 %v196_v3, %v192_v2 }
  0xa7   : > { %v195_v5 = vpop.xlane.xlu0 %194 }
  0xa8   : > { %v198_v6 = vsub.f32 %v195_v5, %v197_v4 }
  0xaa   : > { %v199_v7 = vmul.f32 0.007874016, %v198_v6 }
  0xac   : > { %v200_v8 = vmax.f32 %v199_v7, 0.0 }
  0xae   : > { %383 = vrsqrt.f32 %v200_v8  ;;  %vm208_vm0 = vcmp.eq.f32.partialorder %v200_v8, inf  ;;  %v211_v16 = vand.u32 2147483648, %v200_v8  ;;  %vm210_vm1 = vcmp.eq.f32.partialorder %v200_v8, 0.0 }
  0xb4   : > { %v384_v9 = vpop.eup %383 }
  0xb5   : > { %v202_v10 = vmul.f32 %v384_v9, %v200_v8 }
  0xb7   : > { %v203_v11 = vmul.f32 %v384_v9, %v202_v10 }
  0xb9   : > { %v204_v12 = vmul.f32 0.5, %v203_v11 }
  0xbb   : > { %v205_v13 = vsub.f32 1.5, %v204_v12 }
  0xbd   : > { %v206_v14 = vmul.f32 %v384_v9, %v205_v13 }
  0xbf   : > { %v207_v15 = vmul.f32 %v206_v14, %v200_v8 }
  0xc1   : > { %v209_v17 = vsel %vm208_vm0, %v200_v8, %v207_v15 }
  0xc2   : > { %v212_v18 = vsel %vm210_vm1, %v211_v16, %v209_v17 }
  0xc3   : > { %v213_v19 = vadd.f32 1e-06, %v212_v18 }
  0xc5   : > { %385 = vrcp.f32 %v213_v19  ;;  %v225_v23 = vand.u32 2147483648, %v213_v19  ;;  %v223_v25 = vand.u32 2147483647, %v213_v19  ;;  %vm219_vm3 = vweird.f32 %v213_v19 }
  0xc7   : > { %v226_v28 = vor.u32 1.1754944e-38, %v225_v23  ;;  %vm224_vm5 = vcmp.eq.f32.partialorder %v223_v25, 8.507059e+37 }
  0xcb   : > { %v386_v20 = vpop.eup %385 }
  0xcc   : > { %v215_v21 = vmul.f32 %v386_v20, %v213_v19  ;;  %vm220_vm2 = vweird.f32 %v386_v20 }
  0xcd   : > { %vm221_vm4 = vmor %vm219_vm3, %vm220_vm2 }
  0xce   : > { %v216_v22 = vsub.f32 1.0, %v215_v21 }
  0xd0   : > { %v217_v24 = vmul.f32 %v386_v20, %v216_v22 }
  0xd2   : > { %v218_v26 = vadd.f32 %v386_v20, %v217_v24 }
  0xd4   : > { %v222_v29 = vsel %vm221_vm4, %v386_v20, %v218_v26 }
  0xd5   : > { %v227_v30 = vsel %vm224_vm5, %v226_v28, %v222_v29 }
  0xd6   : > { %v231_v31 = vmul.f32 %v230_v27, %v227_v30 }
  0xd8   : > { %v233_v33 = vmul.f32 %v231_v31, %v196_v3  ;;  %v236_v35 = vmul.f32 %v231_v31, %v190_v0 }
  0xda   : > { %v235_v34 = vsub.f32 %v234_v32, %v233_v33 }
  0xdc   : > { %v237_v36 = vadd.f32 %v236_v35, %v235_v34 }
  0xde   : > { %238 = vst [vmem:[%s189_s9] sm:$0xff] %v237_v36 }
  0xdf   : > { %444 = shalt.err (!%p441_p4)
}
  0xe0   : > { %339 = dma.vmem_to_hbm [thread:$0]  (%p561_p11), %s253_s10, 128, %s255_s11, %s240_s0  }
  0xe1 PF: > { %s266_s24 = sand.u32 1, %s471_s16   ;;  %p651_p7 = scmp.ge.s32.totalorder %s483_s19, 2 }
  0xe2   : > { %s267_s28 = scalar_lea.sflag [#allocation6], %s266_s24 }
  0xe3   : > { %p346_p5 = pnand %p651_p7, %p565_p12 }
  0xe5   : > { %p347_p8 = pneg %p346_p5 }
  0xe7   : > { %466 = dma.done.wait (%p347_p8), %s267_s28, 128  }
  0xe8   : > { %468 = vsyncadd (%p347_p8), %s267_s28, 4294967168  ;;  %p18_p10 = scmp.ge.s32.totalorder %s536_s20, 4   ;;  %s652_s16 = smov %s475_s17 }
  0xe9   : > { %s653_s17 = smov %s479_s18  ;;  %s654_s18 = smov %s548_s23 }
  0xea   : > { %s655_s19 = smov %s536_s20  ;;  %20 = sbr.rel (!%p18_p10) target bundleno = 8 (0x8), region = 77 }
  0xef   :  { %273 = vsyncpa [#allocation5], 1 }
  0xf0   :  { %275 = vsyncpa [#allocation5 + $0x1], 1 }
  0xf1   :  { %276 = vsyncpa [#allocation6], 1 }
  0xf2   :  { %278 = vsyncpa [#allocation6 + $0x1], 1 }

</bundles_post_ra>
